<compile_context>
chip_gen: v7x
topology: tpu7x:2x2x1
jax: 0.10.0
libtpu: 0.0.40
codegen_flags: <defaults>
</compile_context>

<pallas_src>
import functools

import jax
import jax.numpy as jnp
from jax.experimental import pallas as pl
from jax.experimental.pallas import tpu as pltpu


_NUM_SLOTS = 8  # number of in-flight row DMAs


def _embedding_gather_kernel(ids_ref, table_hbm, out_ref, row_buf, sems, *, num_slots):
    # ids_ref:   (N_pad,)       int32   SMEM (scalar-prefetched token ids)
    # table_hbm: (V, D_pad)     f32     HBM  (memory_space=pl.ANY, DMA-gathered)
    # out_ref:   (TILE, D_pad)  f32     VMEM output block
    # row_buf:   (TILE, D_pad)  f32     VMEM gather destination (scratch)
    # sems:      (num_slots,)           DMA semaphores
    tile = out_ref.shape[0]
    base = pl.program_id(0) * tile

    def start_row(t, slot):
        tok = ids_ref[base + t]
        pltpu.make_async_copy(
            table_hbm.at[pl.ds(tok, 1), :],
            row_buf.at[pl.ds(t, 1), :],
            sems.at[slot],
        ).start()

    def wait_slot(slot):
        # Descriptor only needs matching transfer size for the semaphore wait.
        pltpu.make_async_copy(
            table_hbm.at[pl.ds(0, 1), :],
            row_buf.at[pl.ds(0, 1), :],
            sems.at[slot],
        ).wait()

    # Prime the pipeline with `num_slots` outstanding row copies.
    for t in range(num_slots):
        start_row(t, t)

    # Steady state: retire the oldest copy on a slot, then reuse the slot.
    @pl.loop(num_slots, tile)
    def _(t):
        slot = t % num_slots
        wait_slot(slot)
        start_row(t, slot)

    # Drain the remaining in-flight copies.
    for s in range(num_slots):
        wait_slot(s)

    out_ref[...] = row_buf[...]


def bimamba_embeddings(input_ids, embedding_table, *, tile=256):
    """input_ids: (batch, seqlen) int; embedding_table: (vocab, d_model)."""
    batch, seqlen = input_ids.shape
    vocab, d_model = embedding_table.shape
    n = batch * seqlen

    # Lane-dense output: pad d_model to a multiple of 128 (no-op for real BiMamba dims).
    d_pad = ((d_model + 127) // 128) * 128
    table = embedding_table
    if d_pad != d_model:
        table = jnp.pad(embedding_table, ((0, 0), (0, d_pad - d_model)))

    # Token tile: large tiles amortize per-step overhead; shrink for tiny inputs.
    n_min = ((n + 7) // 8) * 8
    tile = max(_NUM_SLOTS, min(tile, n_min))
    tile = ((tile + 7) // 8) * 8
    n_pad = ((n + tile - 1) // tile) * tile

    ids = input_ids.reshape(n).astype(jnp.int32)
    ids = jnp.clip(ids, 0, vocab - 1)  # guard the DMA gather against out-of-range ids
    if n_pad != n:
        ids = jnp.pad(ids, (0, n_pad - n))  # padded tokens gather row 0, sliced off below

    kernel = functools.partial(_embedding_gather_kernel, num_slots=_NUM_SLOTS)

    out = pl.pallas_call(
        kernel,
        out_shape=jax.ShapeDtypeStruct((n_pad, d_pad), table.dtype),
        grid_spec=pltpu.PrefetchScalarGridSpec(
            num_scalar_prefetch=1,
            grid=(n_pad // tile,),
            in_specs=[pl.BlockSpec(memory_space=pl.ANY)],          # table stays in HBM
            out_specs=pl.BlockSpec((tile, d_pad), lambda i, ids: (i, 0)),
            scratch_shapes=[
                pltpu.VMEM((tile, d_pad), table.dtype),            # gather buffer
                pltpu.SemaphoreType.DMA((_NUM_SLOTS,)),            # per-slot DMA sems
            ],
        ),
        compiler_params=pltpu.CompilerParams(
            dimension_semantics=("parallel",),
        ),
    )(ids, table)

    return out[:n, :d_model].reshape(batch, seqlen, d_model)


if __name__ == "__main__":
    # Small, BiMambaConfig-consistent shapes.
    batch, seqlen = 2, 8
    vocab_size = 64          # config.vocab_size (already a multiple of pad_vocab_size_multiple=8)
    d_model = 32             # config.d_model

    key = jax.random.PRNGKey(0)
    k_ids, k_emb = jax.random.split(key)

    input_ids = jax.random.randint(k_ids, (batch, seqlen), 0, vocab_size, dtype=jnp.int32)
    # nn.Embedding default init: N(0, 1)
    embedding_table = jax.random.normal(k_emb, (vocab_size, d_model), dtype=jnp.float32)

    out = bimamba_embeddings(input_ids, embedding_table)
    out = jax.block_until_ready(out)

    # Reference check (plain JAX gather); DMA gather is bit-exact.
    ref = embedding_table[input_ids]
    assert out.shape == (batch, seqlen, d_model)
    assert jnp.array_equal(out, ref), "mismatch vs reference embedding lookup"

    print("KERNEL_OK")
</pallas_src>

<mosaic_0001>
module attributes {stable_mosaic.version = 11 : i64} {
  func.func @_embedding_gather_kernel(%arg0: i32, %arg1: memref<16xi32, #tpu.memory_space<smem>>, %arg2: memref<64x128xf32, #tpu.memory_space<any>>, %arg3: memref<16x128xf32, #tpu.memory_space<vmem>>, %arg4: memref<16x128xf32, #tpu.memory_space<vmem>>, %arg5: memref<8x!tpu.dma_semaphore, #tpu.memory_space<semaphore_mem>>) attributes {dimension_semantics = [#tpu.dimension_semantics<parallel>], iteration_bounds = array<i64: 1>, scalar_prefetch = 1 : i64, scratch_operands = 2 : i64, tpu.core_type = #tpu.core_type<tc>, window_params = [{}, {transform_indices = @transform_1, window_bounds = array<i64: 16, 128>}]} {
    %c16_i32 = arith.constant 16 : i32
    %0 = arith.muli %arg0, %c16_i32 : i32
    %c0_i32 = arith.constant 0 : i32
    %1 = arith.addi %0, %c0_i32 : i32
    %2 = arith.index_cast %1 : i32 to index
    %3 = memref.load %arg1[%2] : memref<16xi32, #tpu.memory_space<smem>>
    %c0_i32_0 = arith.constant 0 : i32
    %c0_i32_1 = arith.constant 0 : i32
    %4 = tpu.memref_slice %arg2[%3, %c0_i32_1] : memref<64x128xf32, #tpu.memory_space<any>> -> memref<1x128xf32, #tpu.memory_space<any>>
    %c0_i32_2 = arith.constant 0 : i32
    %c0_i32_3 = arith.constant 0 : i32
    %5 = tpu.memref_slice %arg4[%c0_i32_2, %c0_i32_3] : memref<16x128xf32, #tpu.memory_space<vmem>> -> memref<1x128xf32, #tpu.memory_space<vmem>>
    %6 = tpu.memref_slice %arg5[%c0_i32_0] : memref<8x!tpu.dma_semaphore, #tpu.memory_space<semaphore_mem>> -> memref<1x!tpu.dma_semaphore, #tpu.memory_space<semaphore_mem>>
    %7 = tpu.memref_squeeze %6 : memref<1x!tpu.dma_semaphore, #tpu.memory_space<semaphore_mem>> -> memref<!tpu.dma_semaphore, #tpu.memory_space<semaphore_mem>>
    tpu.enqueue_dma source(%4 : memref<1x128xf32, #tpu.memory_space<any>>) target(%5 : memref<1x128xf32, #tpu.memory_space<vmem>>) target_semaphore(%7 : memref<!tpu.dma_semaphore, #tpu.memory_space<semaphore_mem>>)
    %c1_i32 = arith.constant 1 : i32
    %8 = arith.addi %0, %c1_i32 : i32
    %9 = arith.index_cast %8 : i32 to index
    %10 = memref.load %arg1[%9] : memref<16xi32, #tpu.memory_space<smem>>
    %c1_i32_4 = arith.constant 1 : i32
    %c0_i32_5 = arith.constant 0 : i32
    %11 = tpu.memref_slice %arg2[%10, %c0_i32_5] : memref<64x128xf32, #tpu.memory_space<any>> -> memref<1x128xf32, #tpu.memory_space<any>>
    %c1_i32_6 = arith.constant 1 : i32
    %c0_i32_7 = arith.constant 0 : i32
    %12 = tpu.memref_slice %arg4[%c1_i32_6, %c0_i32_7] : memref<16x128xf32, #tpu.memory_space<vmem>> -> memref<1x128xf32, #tpu.memory_space<vmem>>
    %13 = tpu.memref_slice %arg5[%c1_i32_4] : memref<8x!tpu.dma_semaphore, #tpu.memory_space<semaphore_mem>> -> memref<1x!tpu.dma_semaphore, #tpu.memory_space<semaphore_mem>>
    %14 = tpu.memref_squeeze %13 : memref<1x!tpu.dma_semaphore, #tpu.memory_space<semaphore_mem>> -> memref<!tpu.dma_semaphore, #tpu.memory_space<semaphore_mem>>
    tpu.enqueue_dma source(%11 : memref<1x128xf32, #tpu.memory_space<any>>) target(%12 : memref<1x128xf32, #tpu.memory_space<vmem>>) target_semaphore(%14 : memref<!tpu.dma_semaphore, #tpu.memory_space<semaphore_mem>>)
    %c2_i32 = arith.constant 2 : i32
    %15 = arith.addi %0, %c2_i32 : i32
    %16 = arith.index_cast %15 : i32 to index
    %17 = memref.load %arg1[%16] : memref<16xi32, #tpu.memory_space<smem>>
    %c2_i32_8 = arith.constant 2 : i32
    %c0_i32_9 = arith.constant 0 : i32
    %18 = tpu.memref_slice %arg2[%17, %c0_i32_9] : memref<64x128xf32, #tpu.memory_space<any>> -> memref<1x128xf32, #tpu.memory_space<any>>
    %c2_i32_10 = arith.constant 2 : i32
    %c0_i32_11 = arith.constant 0 : i32
    %19 = tpu.memref_slice %arg4[%c2_i32_10, %c0_i32_11] : memref<16x128xf32, #tpu.memory_space<vmem>> -> memref<1x128xf32, #tpu.memory_space<vmem>>
    %20 = tpu.memref_slice %arg5[%c2_i32_8] : memref<8x!tpu.dma_semaphore, #tpu.memory_space<semaphore_mem>> -> memref<1x!tpu.dma_semaphore, #tpu.memory_space<semaphore_mem>>
    %21 = tpu.memref_squeeze %20 : memref<1x!tpu.dma_semaphore, #tpu.memory_space<semaphore_mem>> -> memref<!tpu.dma_semaphore, #tpu.memory_space<semaphore_mem>>
    tpu.enqueue_dma source(%18 : memref<1x128xf32, #tpu.memory_space<any>>) target(%19 : memref<1x128xf32, #tpu.memory_space<vmem>>) target_semaphore(%21 : memref<!tpu.dma_semaphore, #tpu.memory_space<semaphore_mem>>)
    %c3_i32 = arith.constant 3 : i32
    %22 = arith.addi %0, %c3_i32 : i32
    %23 = arith.index_cast %22 : i32 to index
    %24 = memref.load %arg1[%23] : memref<16xi32, #tpu.memory_space<smem>>
    %c3_i32_12 = arith.constant 3 : i32
    %c0_i32_13 = arith.constant 0 : i32
    %25 = tpu.memref_slice %arg2[%24, %c0_i32_13] : memref<64x128xf32, #tpu.memory_space<any>> -> memref<1x128xf32, #tpu.memory_space<any>>
    %c3_i32_14 = arith.constant 3 : i32
    %c0_i32_15 = arith.constant 0 : i32
    %26 = tpu.memref_slice %arg4[%c3_i32_14, %c0_i32_15] : memref<16x128xf32, #tpu.memory_space<vmem>> -> memref<1x128xf32, #tpu.memory_space<vmem>>
    %27 = tpu.memref_slice %arg5[%c3_i32_12] : memref<8x!tpu.dma_semaphore, #tpu.memory_space<semaphore_mem>> -> memref<1x!tpu.dma_semaphore, #tpu.memory_space<semaphore_mem>>
    %28 = tpu.memref_squeeze %27 : memref<1x!tpu.dma_semaphore, #tpu.memory_space<semaphore_mem>> -> memref<!tpu.dma_semaphore, #tpu.memory_space<semaphore_mem>>
    tpu.enqueue_dma source(%25 : memref<1x128xf32, #tpu.memory_space<any>>) target(%26 : memref<1x128xf32, #tpu.memory_space<vmem>>) target_semaphore(%28 : memref<!tpu.dma_semaphore, #tpu.memory_space<semaphore_mem>>)
    %c4_i32 = arith.constant 4 : i32
    %29 = arith.addi %0, %c4_i32 : i32
    %30 = arith.index_cast %29 : i32 to index
    %31 = memref.load %arg1[%30] : memref<16xi32, #tpu.memory_space<smem>>
    %c4_i32_16 = arith.constant 4 : i32
    %c0_i32_17 = arith.constant 0 : i32
    %32 = tpu.memref_slice %arg2[%31, %c0_i32_17] : memref<64x128xf32, #tpu.memory_space<any>> -> memref<1x128xf32, #tpu.memory_space<any>>
    %c4_i32_18 = arith.constant 4 : i32
    %c0_i32_19 = arith.constant 0 : i32
    %33 = tpu.memref_slice %arg4[%c4_i32_18, %c0_i32_19] : memref<16x128xf32, #tpu.memory_space<vmem>> -> memref<1x128xf32, #tpu.memory_space<vmem>>
    %34 = tpu.memref_slice %arg5[%c4_i32_16] : memref<8x!tpu.dma_semaphore, #tpu.memory_space<semaphore_mem>> -> memref<1x!tpu.dma_semaphore, #tpu.memory_space<semaphore_mem>>
    %35 = tpu.memref_squeeze %34 : memref<1x!tpu.dma_semaphore, #tpu.memory_space<semaphore_mem>> -> memref<!tpu.dma_semaphore, #tpu.memory_space<semaphore_mem>>
    tpu.enqueue_dma source(%32 : memref<1x128xf32, #tpu.memory_space<any>>) target(%33 : memref<1x128xf32, #tpu.memory_space<vmem>>) target_semaphore(%35 : memref<!tpu.dma_semaphore, #tpu.memory_space<semaphore_mem>>)
    %c5_i32 = arith.constant 5 : i32
    %36 = arith.addi %0, %c5_i32 : i32
    %37 = arith.index_cast %36 : i32 to index
    %38 = memref.load %arg1[%37] : memref<16xi32, #tpu.memory_space<smem>>
    %c5_i32_20 = arith.constant 5 : i32
    %c0_i32_21 = arith.constant 0 : i32
    %39 = tpu.memref_slice %arg2[%38, %c0_i32_21] : memref<64x128xf32, #tpu.memory_space<any>> -> memref<1x128xf32, #tpu.memory_space<any>>
    %c5_i32_22 = arith.constant 5 : i32
    %c0_i32_23 = arith.constant 0 : i32
    %40 = tpu.memref_slice %arg4[%c5_i32_22, %c0_i32_23] : memref<16x128xf32, #tpu.memory_space<vmem>> -> memref<1x128xf32, #tpu.memory_space<vmem>>
    %41 = tpu.memref_slice %arg5[%c5_i32_20] : memref<8x!tpu.dma_semaphore, #tpu.memory_space<semaphore_mem>> -> memref<1x!tpu.dma_semaphore, #tpu.memory_space<semaphore_mem>>
    %42 = tpu.memref_squeeze %41 : memref<1x!tpu.dma_semaphore, #tpu.memory_space<semaphore_mem>> -> memref<!tpu.dma_semaphore, #tpu.memory_space<semaphore_mem>>
    tpu.enqueue_dma source(%39 : memref<1x128xf32, #tpu.memory_space<any>>) target(%40 : memref<1x128xf32, #tpu.memory_space<vmem>>) target_semaphore(%42 : memref<!tpu.dma_semaphore, #tpu.memory_space<semaphore_mem>>)
    %c6_i32 = arith.constant 6 : i32
    %43 = arith.addi %0, %c6_i32 : i32
    %44 = arith.index_cast %43 : i32 to index
    %45 = memref.load %arg1[%44] : memref<16xi32, #tpu.memory_space<smem>>
    %c6_i32_24 = arith.constant 6 : i32
    %c0_i32_25 = arith.constant 0 : i32
    %46 = tpu.memref_slice %arg2[%45, %c0_i32_25] : memref<64x128xf32, #tpu.memory_space<any>> -> memref<1x128xf32, #tpu.memory_space<any>>
    %c6_i32_26 = arith.constant 6 : i32
    %c0_i32_27 = arith.constant 0 : i32
    %47 = tpu.memref_slice %arg4[%c6_i32_26, %c0_i32_27] : memref<16x128xf32, #tpu.memory_space<vmem>> -> memref<1x128xf32, #tpu.memory_space<vmem>>
    %48 = tpu.memref_slice %arg5[%c6_i32_24] : memref<8x!tpu.dma_semaphore, #tpu.memory_space<semaphore_mem>> -> memref<1x!tpu.dma_semaphore, #tpu.memory_space<semaphore_mem>>
    %49 = tpu.memref_squeeze %48 : memref<1x!tpu.dma_semaphore, #tpu.memory_space<semaphore_mem>> -> memref<!tpu.dma_semaphore, #tpu.memory_space<semaphore_mem>>
    tpu.enqueue_dma source(%46 : memref<1x128xf32, #tpu.memory_space<any>>) target(%47 : memref<1x128xf32, #tpu.memory_space<vmem>>) target_semaphore(%49 : memref<!tpu.dma_semaphore, #tpu.memory_space<semaphore_mem>>)
    %c7_i32 = arith.constant 7 : i32
    %50 = arith.addi %0, %c7_i32 : i32
    %51 = arith.index_cast %50 : i32 to index
    %52 = memref.load %arg1[%51] : memref<16xi32, #tpu.memory_space<smem>>
    %c7_i32_28 = arith.constant 7 : i32
    %c0_i32_29 = arith.constant 0 : i32
    %53 = tpu.memref_slice %arg2[%52, %c0_i32_29] : memref<64x128xf32, #tpu.memory_space<any>> -> memref<1x128xf32, #tpu.memory_space<any>>
    %c7_i32_30 = arith.constant 7 : i32
    %c0_i32_31 = arith.constant 0 : i32
    %54 = tpu.memref_slice %arg4[%c7_i32_30, %c0_i32_31] : memref<16x128xf32, #tpu.memory_space<vmem>> -> memref<1x128xf32, #tpu.memory_space<vmem>>
    %55 = tpu.memref_slice %arg5[%c7_i32_28] : memref<8x!tpu.dma_semaphore, #tpu.memory_space<semaphore_mem>> -> memref<1x!tpu.dma_semaphore, #tpu.memory_space<semaphore_mem>>
    %56 = tpu.memref_squeeze %55 : memref<1x!tpu.dma_semaphore, #tpu.memory_space<semaphore_mem>> -> memref<!tpu.dma_semaphore, #tpu.memory_space<semaphore_mem>>
    tpu.enqueue_dma source(%53 : memref<1x128xf32, #tpu.memory_space<any>>) target(%54 : memref<1x128xf32, #tpu.memory_space<vmem>>) target_semaphore(%56 : memref<!tpu.dma_semaphore, #tpu.memory_space<semaphore_mem>>)
    %c0_i32_32 = arith.constant 0 : i32
    %c8_i32 = arith.constant 8 : i32
    %57 = arith.addi %c0_i32_32, %c8_i32 : i32
    %c1_i32_33 = arith.constant 1 : i32
    scf.for %arg6 = %c0_i32_32 to %57 step %c1_i32_33  : i32 {
      %c1_i32_78 = arith.constant 1 : i32
      %92 = arith.muli %arg6, %c1_i32_78 : i32
      %c8_i32_79 = arith.constant 8 : i32
      %93 = arith.addi %c8_i32_79, %92 : i32
      %c8_i32_80 = arith.constant 8 : i32
      %c0_i32_81 = arith.constant 0 : i32
      %94 = arith.cmpi eq, %c8_i32_80, %c0_i32_81 : i32
      %c1_i32_82 = arith.constant 1 : i32
      %95 = arith.select %94, %c1_i32_82, %c8_i32_80 : i32
      %96 = arith.remsi %93, %95 : i32
      %c0_i32_83 = arith.constant 0 : i32
      %97 = arith.cmpi ne, %96, %c0_i32_83 : i32
      %c0_i32_84 = arith.constant 0 : i32
      %98 = arith.cmpi slt, %96, %c0_i32_84 : i32
      %c0_i32_85 = arith.constant 0 : i32
      %99 = arith.cmpi slt, %95, %c0_i32_85 : i32
      %100 = arith.xori %98, %99 : i1
      %101 = arith.andi %100, %97 : i1
      %102 = arith.addi %96, %95 : i32
      %103 = arith.select %101, %102, %96 : i32
      %c0_i32_86 = arith.constant 0 : i32
      %c0_i32_87 = arith.constant 0 : i32
      %104 = tpu.memref_slice %arg2[%c0_i32_86, %c0_i32_87] : memref<64x128xf32, #tpu.memory_space<any>> -> memref<1x128xf32, #tpu.memory_space<any>>
      %c0_i32_88 = arith.constant 0 : i32
      %c0_i32_89 = arith.constant 0 : i32
      %105 = tpu.memref_slice %arg4[%c0_i32_88, %c0_i32_89] : memref<16x128xf32, #tpu.memory_space<vmem>> -> memref<1x128xf32, #tpu.memory_space<vmem>>
      %106 = tpu.memref_slice %arg5[%103] : memref<8x!tpu.dma_semaphore, #tpu.memory_space<semaphore_mem>> -> memref<1x!tpu.dma_semaphore, #tpu.memory_space<semaphore_mem>>
      %107 = tpu.memref_squeeze %106 : memref<1x!tpu.dma_semaphore, #tpu.memory_space<semaphore_mem>> -> memref<!tpu.dma_semaphore, #tpu.memory_space<semaphore_mem>>
      tpu.wait_dma2 semaphore(%107 : memref<!tpu.dma_semaphore, #tpu.memory_space<semaphore_mem>>) src(%104 : memref<1x128xf32, #tpu.memory_space<any>>) dst(%105 : memref<1x128xf32, #tpu.memory_space<vmem>>)
      %108 = arith.addi %0, %93 : i32
      %109 = arith.index_cast %108 : i32 to index
      %110 = memref.load %arg1[%109] : memref<16xi32, #tpu.memory_space<smem>>
      %c0_i32_90 = arith.constant 0 : i32
      %111 = tpu.memref_slice %arg2[%110, %c0_i32_90] : memref<64x128xf32, #tpu.memory_space<any>> -> memref<1x128xf32, #tpu.memory_space<any>>
      %c0_i32_91 = arith.constant 0 : i32
      %112 = tpu.memref_slice %arg4[%93, %c0_i32_91] : memref<16x128xf32, #tpu.memory_space<vmem>> -> memref<1x128xf32, #tpu.memory_space<vmem>>
      %113 = tpu.memref_slice %arg5[%103] : memref<8x!tpu.dma_semaphore, #tpu.memory_space<semaphore_mem>> -> memref<1x!tpu.dma_semaphore, #tpu.memory_space<semaphore_mem>>
      %114 = tpu.memref_squeeze %113 : memref<1x!tpu.dma_semaphore, #tpu.memory_space<semaphore_mem>> -> memref<!tpu.dma_semaphore, #tpu.memory_space<semaphore_mem>>
      tpu.enqueue_dma source(%111 : memref<1x128xf32, #tpu.memory_space<any>>) target(%112 : memref<1x128xf32, #tpu.memory_space<vmem>>) target_semaphore(%114 : memref<!tpu.dma_semaphore, #tpu.memory_space<semaphore_mem>>)
    }
    %c8_i32_34 = arith.constant 8 : i32
    %c0_i32_35 = arith.constant 0 : i32
    %c0_i32_36 = arith.constant 0 : i32
    %c0_i32_37 = arith.constant 0 : i32
    %58 = tpu.memref_slice %arg2[%c0_i32_36, %c0_i32_37] : memref<64x128xf32, #tpu.memory_space<any>> -> memref<1x128xf32, #tpu.memory_space<any>>
    %c0_i32_38 = arith.constant 0 : i32
    %c0_i32_39 = arith.constant 0 : i32
    %59 = tpu.memref_slice %arg4[%c0_i32_38, %c0_i32_39] : memref<16x128xf32, #tpu.memory_space<vmem>> -> memref<1x128xf32, #tpu.memory_space<vmem>>
    %60 = tpu.memref_slice %arg5[%c0_i32_35] : memref<8x!tpu.dma_semaphore, #tpu.memory_space<semaphore_mem>> -> memref<1x!tpu.dma_semaphore, #tpu.memory_space<semaphore_mem>>
    %61 = tpu.memref_squeeze %60 : memref<1x!tpu.dma_semaphore, #tpu.memory_space<semaphore_mem>> -> memref<!tpu.dma_semaphore, #tpu.memory_space<semaphore_mem>>
    tpu.wait_dma2 semaphore(%61 : memref<!tpu.dma_semaphore, #tpu.memory_space<semaphore_mem>>) src(%58 : memref<1x128xf32, #tpu.memory_space<any>>) dst(%59 : memref<1x128xf32, #tpu.memory_space<vmem>>)
    %c1_i32_40 = arith.constant 1 : i32
    %c0_i32_41 = arith.constant 0 : i32
    %c0_i32_42 = arith.constant 0 : i32
    %62 = tpu.memref_slice %arg2[%c0_i32_41, %c0_i32_42] : memref<64x128xf32, #tpu.memory_space<any>> -> memref<1x128xf32, #tpu.memory_space<any>>
    %c0_i32_43 = arith.constant 0 : i32
    %c0_i32_44 = arith.constant 0 : i32
    %63 = tpu.memref_slice %arg4[%c0_i32_43, %c0_i32_44] : memref<16x128xf32, #tpu.memory_space<vmem>> -> memref<1x128xf32, #tpu.memory_space<vmem>>
    %64 = tpu.memref_slice %arg5[%c1_i32_40] : memref<8x!tpu.dma_semaphore, #tpu.memory_space<semaphore_mem>> -> memref<1x!tpu.dma_semaphore, #tpu.memory_space<semaphore_mem>>
    %65 = tpu.memref_squeeze %64 : memref<1x!tpu.dma_semaphore, #tpu.memory_space<semaphore_mem>> -> memref<!tpu.dma_semaphore, #tpu.memory_space<semaphore_mem>>
    tpu.wait_dma2 semaphore(%65 : memref<!tpu.dma_semaphore, #tpu.memory_space<semaphore_mem>>) src(%62 : memref<1x128xf32, #tpu.memory_space<any>>) dst(%63 : memref<1x128xf32, #tpu.memory_space<vmem>>)
    %c2_i32_45 = arith.constant 2 : i32
    %c0_i32_46 = arith.constant 0 : i32
    %c0_i32_47 = arith.constant 0 : i32
    %66 = tpu.memref_slice %arg2[%c0_i32_46, %c0_i32_47] : memref<64x128xf32, #tpu.memory_space<any>> -> memref<1x128xf32, #tpu.memory_space<any>>
    %c0_i32_48 = arith.constant 0 : i32
    %c0_i32_49 = arith.constant 0 : i32
    %67 = tpu.memref_slice %arg4[%c0_i32_48, %c0_i32_49] : memref<16x128xf32, #tpu.memory_space<vmem>> -> memref<1x128xf32, #tpu.memory_space<vmem>>
    %68 = tpu.memref_slice %arg5[%c2_i32_45] : memref<8x!tpu.dma_semaphore, #tpu.memory_space<semaphore_mem>> -> memref<1x!tpu.dma_semaphore, #tpu.memory_space<semaphore_mem>>
    %69 = tpu.memref_squeeze %68 : memref<1x!tpu.dma_semaphore, #tpu.memory_space<semaphore_mem>> -> memref<!tpu.dma_semaphore, #tpu.memory_space<semaphore_mem>>
    tpu.wait_dma2 semaphore(%69 : memref<!tpu.dma_semaphore, #tpu.memory_space<semaphore_mem>>) src(%66 : memref<1x128xf32, #tpu.memory_space<any>>) dst(%67 : memref<1x128xf32, #tpu.memory_space<vmem>>)
    %c3_i32_50 = arith.constant 3 : i32
    %c0_i32_51 = arith.constant 0 : i32
    %c0_i32_52 = arith.constant 0 : i32
    %70 = tpu.memref_slice %arg2[%c0_i32_51, %c0_i32_52] : memref<64x128xf32, #tpu.memory_space<any>> -> memref<1x128xf32, #tpu.memory_space<any>>
    %c0_i32_53 = arith.constant 0 : i32
    %c0_i32_54 = arith.constant 0 : i32
    %71 = tpu.memref_slice %arg4[%c0_i32_53, %c0_i32_54] : memref<16x128xf32, #tpu.memory_space<vmem>> -> memref<1x128xf32, #tpu.memory_space<vmem>>
    %72 = tpu.memref_slice %arg5[%c3_i32_50] : memref<8x!tpu.dma_semaphore, #tpu.memory_space<semaphore_mem>> -> memref<1x!tpu.dma_semaphore, #tpu.memory_space<semaphore_mem>>
    %73 = tpu.memref_squeeze %72 : memref<1x!tpu.dma_semaphore, #tpu.memory_space<semaphore_mem>> -> memref<!tpu.dma_semaphore, #tpu.memory_space<semaphore_mem>>
    tpu.wait_dma2 semaphore(%73 : memref<!tpu.dma_semaphore, #tpu.memory_space<semaphore_mem>>) src(%70 : memref<1x128xf32, #tpu.memory_space<any>>) dst(%71 : memref<1x128xf32, #tpu.memory_space<vmem>>)
    %c4_i32_55 = arith.constant 4 : i32
    %c0_i32_56 = arith.constant 0 : i32
    %c0_i32_57 = arith.constant 0 : i32
    %74 = tpu.memref_slice %arg2[%c0_i32_56, %c0_i32_57] : memref<64x128xf32, #tpu.memory_space<any>> -> memref<1x128xf32, #tpu.memory_space<any>>
    %c0_i32_58 = arith.constant 0 : i32
    %c0_i32_59 = arith.constant 0 : i32
    %75 = tpu.memref_slice %arg4[%c0_i32_58, %c0_i32_59] : memref<16x128xf32, #tpu.memory_space<vmem>> -> memref<1x128xf32, #tpu.memory_space<vmem>>
    %76 = tpu.memref_slice %arg5[%c4_i32_55] : memref<8x!tpu.dma_semaphore, #tpu.memory_space<semaphore_mem>> -> memref<1x!tpu.dma_semaphore, #tpu.memory_space<semaphore_mem>>
    %77 = tpu.memref_squeeze %76 : memref<1x!tpu.dma_semaphore, #tpu.memory_space<semaphore_mem>> -> memref<!tpu.dma_semaphore, #tpu.memory_space<semaphore_mem>>
    tpu.wait_dma2 semaphore(%77 : memref<!tpu.dma_semaphore, #tpu.memory_space<semaphore_mem>>) src(%74 : memref<1x128xf32, #tpu.memory_space<any>>) dst(%75 : memref<1x128xf32, #tpu.memory_space<vmem>>)
    %c5_i32_60 = arith.constant 5 : i32
    %c0_i32_61 = arith.constant 0 : i32
    %c0_i32_62 = arith.constant 0 : i32
    %78 = tpu.memref_slice %arg2[%c0_i32_61, %c0_i32_62] : memref<64x128xf32, #tpu.memory_space<any>> -> memref<1x128xf32, #tpu.memory_space<any>>
    %c0_i32_63 = arith.constant 0 : i32
    %c0_i32_64 = arith.constant 0 : i32
    %79 = tpu.memref_slice %arg4[%c0_i32_63, %c0_i32_64] : memref<16x128xf32, #tpu.memory_space<vmem>> -> memref<1x128xf32, #tpu.memory_space<vmem>>
    %80 = tpu.memref_slice %arg5[%c5_i32_60] : memref<8x!tpu.dma_semaphore, #tpu.memory_space<semaphore_mem>> -> memref<1x!tpu.dma_semaphore, #tpu.memory_space<semaphore_mem>>
    %81 = tpu.memref_squeeze %80 : memref<1x!tpu.dma_semaphore, #tpu.memory_space<semaphore_mem>> -> memref<!tpu.dma_semaphore, #tpu.memory_space<semaphore_mem>>
    tpu.wait_dma2 semaphore(%81 : memref<!tpu.dma_semaphore, #tpu.memory_space<semaphore_mem>>) src(%78 : memref<1x128xf32, #tpu.memory_space<any>>) dst(%79 : memref<1x128xf32, #tpu.memory_space<vmem>>)
    %c6_i32_65 = arith.constant 6 : i32
    %c0_i32_66 = arith.constant 0 : i32
    %c0_i32_67 = arith.constant 0 : i32
    %82 = tpu.memref_slice %arg2[%c0_i32_66, %c0_i32_67] : memref<64x128xf32, #tpu.memory_space<any>> -> memref<1x128xf32, #tpu.memory_space<any>>
    %c0_i32_68 = arith.constant 0 : i32
    %c0_i32_69 = arith.constant 0 : i32
    %83 = tpu.memref_slice %arg4[%c0_i32_68, %c0_i32_69] : memref<16x128xf32, #tpu.memory_space<vmem>> -> memref<1x128xf32, #tpu.memory_space<vmem>>
    %84 = tpu.memref_slice %arg5[%c6_i32_65] : memref<8x!tpu.dma_semaphore, #tpu.memory_space<semaphore_mem>> -> memref<1x!tpu.dma_semaphore, #tpu.memory_space<semaphore_mem>>
    %85 = tpu.memref_squeeze %84 : memref<1x!tpu.dma_semaphore, #tpu.memory_space<semaphore_mem>> -> memref<!tpu.dma_semaphore, #tpu.memory_space<semaphore_mem>>
    tpu.wait_dma2 semaphore(%85 : memref<!tpu.dma_semaphore, #tpu.memory_space<semaphore_mem>>) src(%82 : memref<1x128xf32, #tpu.memory_space<any>>) dst(%83 : memref<1x128xf32, #tpu.memory_space<vmem>>)
    %c7_i32_70 = arith.constant 7 : i32
    %c0_i32_71 = arith.constant 0 : i32
    %c0_i32_72 = arith.constant 0 : i32
    %86 = tpu.memref_slice %arg2[%c0_i32_71, %c0_i32_72] : memref<64x128xf32, #tpu.memory_space<any>> -> memref<1x128xf32, #tpu.memory_space<any>>
    %c0_i32_73 = arith.constant 0 : i32
    %c0_i32_74 = arith.constant 0 : i32
    %87 = tpu.memref_slice %arg4[%c0_i32_73, %c0_i32_74] : memref<16x128xf32, #tpu.memory_space<vmem>> -> memref<1x128xf32, #tpu.memory_space<vmem>>
    %88 = tpu.memref_slice %arg5[%c7_i32_70] : memref<8x!tpu.dma_semaphore, #tpu.memory_space<semaphore_mem>> -> memref<1x!tpu.dma_semaphore, #tpu.memory_space<semaphore_mem>>
    %89 = tpu.memref_squeeze %88 : memref<1x!tpu.dma_semaphore, #tpu.memory_space<semaphore_mem>> -> memref<!tpu.dma_semaphore, #tpu.memory_space<semaphore_mem>>
    tpu.wait_dma2 semaphore(%89 : memref<!tpu.dma_semaphore, #tpu.memory_space<semaphore_mem>>) src(%86 : memref<1x128xf32, #tpu.memory_space<any>>) dst(%87 : memref<1x128xf32, #tpu.memory_space<vmem>>)
    %c0 = arith.constant 0 : index
    %c0_75 = arith.constant 0 : index
    %90 = vector.load %arg4[%c0, %c0_75] : memref<16x128xf32, #tpu.memory_space<vmem>>, vector<16x128xf32>
    %c0_76 = arith.constant 0 : index
    %c0_77 = arith.constant 0 : index
    %91 = vector.load %arg3[%c0_76, %c0_77] : memref<16x128xf32, #tpu.memory_space<vmem>>, vector<16x128xf32>
    tpu.vector_store %arg3[%c0_76, %c0_77], %90 {strides = array<i32>} : memref<16x128xf32, #tpu.memory_space<vmem>>, vector<16x128xf32>,
    return
  }
  func.func @transform_1(%arg0: i32, %arg1: memref<16xi32, #tpu.memory_space<smem>>) -> (i32, i32) {
    %c0_i32 = arith.constant 0 : i32
    %c0_i32_0 = arith.constant 0 : i32
    return %arg0, %c0_i32 : i32, i32
  }
}

</mosaic_0001>

<bundles_post_ra>
// kernel: tpu_custom_call.1
= control target key start
LH: loop header
LB: loop body
LE: loop exit
PB: predicated region body
PF: predicated region fallthrough
CT: control target
= control target key end

     0   :  { %s826_s0 = inlined_call_operand.hbm [shape: s32[16], index: 0, kind: input, shape index: {}]   ;;  %s827_s1 = inlined_call_operand.hbm [shape: f32[64,128], index: 1, kind: input, shape index: {}]   ;;  %s828_s2 = inlined_call_operand.hbm [shape: f32[16,128], index: 2, kind: output, shape index: {}]  }
   0x1   :  { %s350_s11 = scalar_lea.hbm %s826_s0, 16 }
   0x2   :  { %p351_p0 = scmp.ne.s32.totalorder %s826_s0, %s350_s11  ;;  %p354_p1 = scmp.lt.u32.totalorder %s350_s11, %s826_s0 }
   0x4   :  { %p356_p2 = pnand %p354_p1, %p351_p0 }
   0x6   :  { %359 = shalt.err (!%p356_p2)  }
   0x7   :  { %s628_s16 = smov [#allocation5]  }
   0x8   :  { %8 = dma.hbm_to_smem %s826_s0, 16, %s628_s16, [#allocation4] }
   0x9   :  { %602 = dma.done.wait [#allocation4], 16 }
   0xa   :  { %603 = vsyncadd [#allocation4], 4294967280 }
   0xb   :  { %10 = sfence }
   0xc   :  { %11 = vsyncpa [#allocation7], 0  ;;  %s13_s19 = sld [smem:[#allocation5]]  ;;  %s629_s20 = smov [#allocation2]  }
   0xd   :  { %s23_s21 = sshll.u32 %s629_s20, 4  ;;  %s667_s22 = sld [smem:[#allocation5 + $0x1]]  ;;  %s669_s21 = int_to_ptr.vmem [resolvable:$true] %s23_s21 }
   0xe   :  { %s630_s23 = smov [#allocation2 + $0x1]   ;;  %s671_s25 = sld [smem:[#allocation5 + $0x2]] }
   0xf   :  { %s40_s24 = sshll.u32 %s630_s23, 4  ;;  %s631_s26 = smov [#allocation2 + $0x2]   ;;  %s673_s24 = int_to_ptr.vmem [resolvable:$true] %s40_s24 }
  0x10   :  { %s57_s0 = sshll.u32 %s631_s26, 4  ;;  %s675_s27 = sld [smem:[#allocation5 + $0x3]]  ;;  %s677_s0 = int_to_ptr.vmem [resolvable:$true] %s57_s0 }
  0x11   :  { %s686_s8 = scalar_lea.hbm %s827_s1, 1024 }
  0x12   :  { %s303_s28 = sshll.u32 %s13_s19, 4 }
  0x13   :  { %s15_s3 = scalar_lea.hbm %s827_s1, %s303_s28  ;;  %s305_s4 = sshll.u32 %s667_s22, 4 }
  0x14   :  { %s360_s5 = scalar_lea.hbm %s15_s3, 16  ;;  %p363_p4 = scmp.lt.u32.totalorder %s15_s3, %s827_s1 }
  0x15   :  { %p361_p3 = scmp.ne.s32.totalorder %s15_s3, %s360_s5  ;;  %p364_p5 = scmp.lt.u32.totalorder %s686_s8, %s360_s5 }
  0x16   :  { %p366_p7 = scmp.lt.u32.totalorder %s360_s5, %s15_s3 }
  0x17   :  { %p365_p6 = por %p364_p5, %p363_p4 }
  0x19   :  { %p367_p8 = por %p366_p7, %p365_p6 }
  0x1b   :  { %p368_p9 = pnand %p367_p8, %p361_p3 }
  0x1d   :  { %371 = shalt.err (!%p368_p9)  }
  0x1e   :  { %s372_s11 = scalar_lea.vmem %s669_s21, 16  ;;  %s695_s12 = scalar_lea.vmem %s669_s21, 256 }
  0x1f   :  { %p373_p10 = scmp.ne.s32.totalorder %s669_s21, %s372_s11  ;;  %p377_p11 = scmp.lt.s32.totalorder %s669_s21, %s669_s21 }
  0x20   :  { %p378_p12 = scmp.lt.s32.totalorder %s695_s12, %s372_s11 }
  0x22   :  { %p379_p13 = por %p378_p12, %p377_p11 }
  0x24   :  { %p380_p0 = pnand %p379_p13, %p373_p10 }
  0x26   :  { %383 = shalt.err (!%p380_p0)  }
  0x27   :  { %26 = dma.hbm_to_vmem [thread:$0]  %s15_s3, 16, %s669_s21, [#allocation3] }
  0x28   :  { %s30_s15 = scalar_lea.hbm %s827_s1, %s305_s4  ;;  %s307_s16 = sshll.u32 %s671_s25, 4 }
  0x29   :  { %s384_s17 = scalar_lea.hbm %s30_s15, 16  ;;  %p387_p2 = scmp.lt.u32.totalorder %s30_s15, %s827_s1 }
  0x2a   :  { %p385_p1 = scmp.ne.s32.totalorder %s30_s15, %s384_s17  ;;  %p388_p3 = scmp.lt.u32.totalorder %s686_s8, %s384_s17 }
  0x2b   :  { %p390_p5 = scmp.lt.u32.totalorder %s384_s17, %s30_s15 }
  0x2c   :  { %p389_p4 = por %p388_p3, %p387_p2 }
  0x2e   :  { %p391_p6 = por %p390_p5, %p389_p4 }
  0x30   :  { %p392_p7 = pnand %p391_p6, %p385_p1 }
  0x32   :  { %395 = shalt.err (!%p392_p7)  }
  0x33   :  { %s396_s20 = scalar_lea.vmem %s673_s24, 16  ;;  %p401_p9 = scmp.lt.s32.totalorder %s673_s24, %s669_s21 }
  0x34   :  { %p397_p8 = scmp.ne.s32.totalorder %s673_s24, %s396_s20  ;;  %p402_p10 = scmp.lt.s32.totalorder %s695_s12, %s396_s20 }
  0x36   :  { %p403_p11 = por %p402_p10, %p401_p9 }
  0x38   :  { %p404_p12 = pnand %p403_p11, %p397_p8 }
  0x3a   :  { %407 = shalt.err (!%p404_p12)  }
  0x3b   :  { %43 = dma.hbm_to_vmem [thread:$0]  %s30_s15, 16, %s673_s24, [#allocation3 + $0x1] }
  0x3c   :  { %s47_s25 = scalar_lea.hbm %s827_s1, %s307_s16  ;;  %s309_s26 = sshll.u32 %s675_s27, 4 }
  0x3d   :  { %s408_s28 = scalar_lea.hbm %s47_s25, 16  ;;  %p411_p0 = scmp.lt.u32.totalorder %s47_s25, %s827_s1 }
  0x3e   :  { %p409_p13 = scmp.ne.s32.totalorder %s47_s25, %s408_s28  ;;  %p412_p1 = scmp.lt.u32.totalorder %s686_s8, %s408_s28 }
  0x3f   :  { %p414_p3 = scmp.lt.u32.totalorder %s408_s28, %s47_s25 }
  0x40   :  { %p413_p2 = por %p412_p1, %p411_p0 }
  0x42   :  { %p415_p4 = por %p414_p3, %p413_p2 }
  0x44   :  { %p416_p5 = pnand %p415_p4, %p409_p13 }
  0x46   :  { %419 = shalt.err (!%p416_p5)  }
  0x47   :  { %s420_s24 = scalar_lea.vmem %s677_s0, 16  ;;  %p425_p7 = scmp.lt.s32.totalorder %s677_s0, %s669_s21 }
  0x48   :  { %p421_p6 = scmp.ne.s32.totalorder %s677_s0, %s420_s24  ;;  %p426_p8 = scmp.lt.s32.totalorder %s695_s12, %s420_s24 }
  0x4a   :  { %p427_p9 = por %p426_p8, %p425_p7 }
  0x4c   :  { %p428_p10 = pnand %p427_p9, %p421_p6 }
  0x4e   :  { %431 = shalt.err (!%p428_p10)  }
  0x4f   :  { %60 = dma.hbm_to_vmem [thread:$0]  %s47_s25, 16, %s677_s0, [#allocation3 + $0x2] }
  0x50   :  { %s64_s4 = scalar_lea.hbm %s827_s1, %s309_s26  ;;  %s632_s5 = smov [#allocation2 + $0x3]  }
  0x51   :  { %s74_s6 = sshll.u32 %s632_s5, 4  ;;  %s732_s7 = sld [smem:[#allocation5 + $0x4]]  ;;  %s75_s6 = int_to_ptr.vmem [resolvable:$true] %s74_s6 }
  0x52   :  { %s432_s9 = scalar_lea.hbm %s64_s4, 16  ;;  %p435_p12 = scmp.lt.u32.totalorder %s64_s4, %s827_s1 }
  0x53   :  { %p433_p11 = scmp.ne.s32.totalorder %s64_s4, %s432_s9  ;;  %p436_p13 = scmp.lt.u32.totalorder %s686_s8, %s432_s9 }
  0x54   :  { %p438_p1 = scmp.lt.u32.totalorder %s432_s9, %s64_s4 }
  0x55   :  { %p437_p0 = por %p436_p13, %p435_p12 }
  0x57   :  { %p439_p2 = por %p438_p1, %p437_p0 }
  0x59   :  { %p440_p3 = pnand %p439_p2, %p433_p11 }
  0x5b   :  { %443 = shalt.err (!%p440_p3)  }
  0x5c   :  { %s444_s0 = scalar_lea.vmem %s75_s6, 16  ;;  %p449_p5 = scmp.lt.s32.totalorder %s75_s6, %s669_s21 }
  0x5d   :  { %p445_p4 = scmp.ne.s32.totalorder %s75_s6, %s444_s0  ;;  %p450_p6 = scmp.lt.s32.totalorder %s695_s12, %s444_s0 }
  0x5f   :  { %p451_p7 = por %p450_p6, %p449_p5 }
  0x61   :  { %p452_p8 = pnand %p451_p7, %p445_p4 }
  0x63   :  { %455 = shalt.err (!%p452_p8)  }
  0x64   :  { %77 = dma.hbm_to_vmem [thread:$0]  %s64_s4, 16, %s75_s6, [#allocation3 + $0x3] }
  0x65   :  { %s633_s13 = smov [#allocation2 + $0x4]   ;;  %s740_s15 = sld [smem:[#allocation5 + $0x5]] }
  0x66   :  { %s91_s14 = sshll.u32 %s633_s13, 4  ;;  %s634_s16 = smov [#allocation2 + $0x5]   ;;  %s92_s14 = int_to_ptr.vmem [resolvable:$true] %s91_s14 }
  0x67   :  { %s108_s17 = sshll.u32 %s634_s16, 4  ;;  %s742_s18 = sld [smem:[#allocation5 + $0x6]]  ;;  %s745_s17 = int_to_ptr.vmem [resolvable:$true] %s108_s17 }
  0x68   :  { %s311_s19 = sshll.u32 %s732_s7, 4 }
  0x69   :  { %s81_s23 = scalar_lea.hbm %s827_s1, %s311_s19 }
  0x6a   :  { %s456_s25 = scalar_lea.hbm %s81_s23, 16  ;;  %p459_p10 = scmp.lt.u32.totalorder %s81_s23, %s827_s1 }
  0x6b   :  { %p457_p9 = scmp.ne.s32.totalorder %s81_s23, %s456_s25  ;;  %p460_p11 = scmp.lt.u32.totalorder %s686_s8, %s456_s25 }
  0x6c   :  { %p462_p13 = scmp.lt.u32.totalorder %s456_s25, %s81_s23 }
  0x6d   :  { %p461_p12 = por %p460_p11, %p459_p10 }
  0x6f   :  { %p463_p0 = por %p462_p13, %p461_p12 }
  0x71   :  { %p464_p1 = pnand %p463_p0, %p457_p9 }
  0x73   :  { %467 = shalt.err (!%p464_p1)  }
  0x74   :  { %s468_s29 = scalar_lea.vmem %s92_s14, 16  ;;  %p473_p3 = scmp.lt.s32.totalorder %s92_s14, %s669_s21 }
  0x75   :  { %p469_p2 = scmp.ne.s32.totalorder %s92_s14, %s468_s29  ;;  %p474_p4 = scmp.lt.s32.totalorder %s695_s12, %s468_s29 }
  0x77   :  { %p475_p5 = por %p474_p4, %p473_p3 }
  0x79   :  { %p476_p6 = pnand %p475_p5, %p469_p2 }
  0x7b   :  { %479 = shalt.err (!%p476_p6)  }
  0x7c   :  { %94 = dma.hbm_to_vmem [thread:$0]  %s81_s23, 16, %s92_s14, [#allocation3 + $0x4] }
  0x7d   :  { %s313_s30 = sshll.u32 %s740_s15, 4  ;;  %s635_s24 = smov [#allocation2 + $0x6]  }
  0x7e   :  { %s125_s27 = sshll.u32 %s635_s24, 4  ;;  %s98_s5 = scalar_lea.hbm %s827_s1, %s313_s30  ;;  %s760_s27 = int_to_ptr.vmem [resolvable:$true] %s125_s27 }
  0x7f   :  { %s480_s6 = scalar_lea.hbm %s98_s5, 16  ;;  %p483_p8 = scmp.lt.u32.totalorder %s98_s5, %s827_s1 }
  0x80   :  { %p481_p7 = scmp.ne.s32.totalorder %s98_s5, %s480_s6  ;;  %p484_p9 = scmp.lt.u32.totalorder %s686_s8, %s480_s6 }
  0x81   :  { %p486_p11 = scmp.lt.u32.totalorder %s480_s6, %s98_s5 }
  0x82   :  { %p485_p10 = por %p484_p9, %p483_p8 }
  0x84   :  { %p487_p12 = por %p486_p11, %p485_p10 }
  0x86   :  { %p488_p13 = pnand %p487_p12, %p481_p7 }
  0x88   :  { %491 = shalt.err (!%p488_p13)  }
  0x89   :  { %s492_s10 = scalar_lea.vmem %s745_s17, 16  ;;  %p497_p1 = scmp.lt.s32.totalorder %s745_s17, %s669_s21 }
  0x8a   :  { %p493_p0 = scmp.ne.s32.totalorder %s745_s17, %s492_s10  ;;  %p498_p2 = scmp.lt.s32.totalorder %s695_s12, %s492_s10 }
  0x8c   :  { %p499_p3 = por %p498_p2, %p497_p1 }
  0x8e   :  { %p500_p4 = pnand %p499_p3, %p493_p0 }
  0x90   :  { %503 = shalt.err (!%p500_p4)  }
  0x91   :  { %111 = dma.hbm_to_vmem [thread:$0]  %s98_s5, 16, %s745_s17, [#allocation3 + $0x5] }
  0x92   :  { %s315_s11 = sshll.u32 %s742_s18, 4  ;;  %s316_s0 = sld [smem:[#allocation5 + $0x7]] }
  0x93   :  { %s115_s15 = scalar_lea.hbm %s827_s1, %s315_s11 }
  0x94   :  { %s504_s16 = scalar_lea.hbm %s115_s15, 16  ;;  %p507_p6 = scmp.lt.u32.totalorder %s115_s15, %s827_s1 }
  0x95   :  { %p505_p5 = scmp.ne.s32.totalorder %s115_s15, %s504_s16  ;;  %p508_p7 = scmp.lt.u32.totalorder %s686_s8, %s504_s16 }
  0x96   :  { %p510_p9 = scmp.lt.u32.totalorder %s504_s16, %s115_s15 }
  0x97   :  { %p509_p8 = por %p508_p7, %p507_p6 }
  0x99   :  { %p511_p10 = por %p510_p9, %p509_p8 }
  0x9b   :  { %p512_p11 = pnand %p511_p10, %p505_p5 }
  0x9d   :  { %515 = shalt.err (!%p512_p11)  }
  0x9e   :  { %s516_s17 = scalar_lea.vmem %s760_s27, 16  ;;  %p521_p13 = scmp.lt.s32.totalorder %s760_s27, %s669_s21 }
  0x9f   :  { %p517_p12 = scmp.ne.s32.totalorder %s760_s27, %s516_s17  ;;  %p522_p0 = scmp.lt.s32.totalorder %s695_s12, %s516_s17 }
  0xa1   :  { %p523_p1 = por %p522_p0, %p521_p13 }
  0xa3   :  { %p524_p2 = pnand %p523_p1, %p517_p12 }
  0xa5   :  { %527 = shalt.err (!%p524_p2)  }
  0xa6   :  { %128 = dma.hbm_to_vmem [thread:$0]  %s115_s15, 16, %s760_s27, [#allocation3 + $0x6] }
  0xa7   :  { %s636_s18 = smov [#allocation2 + $0x7]   ;;  %s317_s23 = sshll.u32 %s316_s0, 4 }
  0xa8   :  { %s142_s22 = sshll.u32 %s636_s18, 4  ;;  %s132_s28 = scalar_lea.hbm %s827_s1, %s317_s23  ;;  %s143_s22 = int_to_ptr.vmem [resolvable:$true] %s142_s22 }
  0xa9   :  { %s528_s29 = scalar_lea.hbm %s132_s28, 16  ;;  %p531_p4 = scmp.lt.u32.totalorder %s132_s28, %s827_s1 }
  0xaa   :  { %p529_p3 = scmp.ne.s32.totalorder %s132_s28, %s528_s29  ;;  %p532_p5 = scmp.lt.u32.totalorder %s686_s8, %s528_s29 }
  0xab   :  { %p534_p7 = scmp.lt.u32.totalorder %s528_s29, %s132_s28 }
  0xac   :  { %p533_p6 = por %p532_p5, %p531_p4 }
  0xae   :  { %p535_p8 = por %p534_p7, %p533_p6 }
  0xb0   :  { %p536_p9 = pnand %p535_p8, %p529_p3 }
  0xb2   :  { %539 = shalt.err (!%p536_p9)  }
  0xb3   :  { %s540_s27 = scalar_lea.vmem %s143_s22, 16  ;;  %p545_p11 = scmp.lt.s32.totalorder %s143_s22, %s669_s21 }
  0xb4   :  { %p541_p10 = scmp.ne.s32.totalorder %s143_s22, %s540_s27  ;;  %p546_p12 = scmp.lt.s32.totalorder %s695_s12, %s540_s27 }
  0xb6   :  { %p547_p13 = por %p546_p12, %p545_p11 }
  0xb8   :  { %p548_p0 = pnand %p547_p13, %p541_p10 }
  0xba   :  { %551 = shalt.err (!%p548_p0)  }
  0xbb   :  { %145 = dma.hbm_to_vmem [thread:$0]  %s132_s28, 16, %s143_s22, [#allocation3 + $0x7] }
  0xbc   :  { %s795_s3 = smov 0  }
  0xbd LB: > { %s152_s4 = sadd.s32 8, %s626_s3  ;;  %s626_s3 = sphi %s795_s3, %s151_s3  }
  0xbe   : > { %p153_p1 = scmp.lt.s32.totalorder %s152_s4, 0  ;;  %s154_s5 = ssub.s32 0, %s152_s4 }
  0xbf   : > { %s318_s6 = smin.u32 %s154_s5, %s152_s4 }
  0xc0   : > { %s156_s7 = sand.u32 7, %s318_s6  }
  0xc1   : > { %s157_s9 = ssub.s32 0, %s156_s7 }
  0xc2   : > { %s830_s9 = smov (!%p153_p1, %s157_s9), %s156_s7 }
  0xc3   : > { %p320_p2 = scmp.lt.s32.totalorder %s830_s9, 0  ;;  %s163_s10 = sadd.s32 8, %s830_s9 }
  0xc5   : > { %s832_s10 = smov (!%p320_p2, %s163_s10), %s830_s9 }
  0xc6   : > { %s165_s11 = scalar_lea.sflag [#allocation3], %s832_s10 }
  0xc7   : > { %604 = dma.done.wait %s165_s11, 16 }
  0xc8   : > { %605 = vsyncadd %s165_s11, 4294967280  ;;  %s170_s0 = sld [smem:[#allocation5 + %s152_s4]]  ;;  %s296_s13 = scalar_lea.vmem [#allocation2], %s626_s3 }
  0xc9   : > { %s297_s14 = scalar_lea.vmem %s296_s13, 8 [#allocation2] }
  0xca   : > { %s181_s15 = sshll.u32 %s297_s14, 4  ;;  %s182_s15 = int_to_ptr.vmem [resolvable:$true] %s181_s15 }
  0xce   : > { %s321_s16 = sshll.u32 %s170_s0, 4 }
  0xcf   : > { %s172_s17 = scalar_lea.hbm %s827_s1, %s321_s16 }
  0xd0   : > { %s552_s18 = scalar_lea.hbm %s172_s17, 16  ;;  %p555_p4 = scmp.lt.u32.totalorder %s172_s17, %s827_s1 }
  0xd1   : > { %p553_p3 = scmp.ne.s32.totalorder %s172_s17, %s552_s18  ;;  %p556_p5 = scmp.lt.u32.totalorder %s686_s8, %s552_s18 }
  0xd2   : > { %p558_p7 = scmp.lt.u32.totalorder %s552_s18, %s172_s17 }
  0xd3   : > { %p557_p6 = por %p556_p5, %p555_p4 }
  0xd5   : > { %p559_p8 = por %p558_p7, %p557_p6 }
  0xd7   : > { %p560_p9 = pnand %p559_p8, %p553_p3 }
  0xd9   : > { %563 = shalt.err (!%p560_p9)  }
  0xda   : > { %s564_s25 = scalar_lea.vmem %s182_s15, 16  ;;  %p569_p11 = scmp.lt.s32.totalorder %s182_s15, %s669_s21 }
  0xdb   : > { %p565_p10 = scmp.ne.s32.totalorder %s182_s15, %s564_s25  ;;  %p570_p12 = scmp.lt.s32.totalorder %s695_s12, %s564_s25 }
  0xdd   : > { %p571_p13 = por %p570_p12, %p569_p11 }
  0xdf   : > { %p572_p0 = pnand %p571_p13, %p565_p10 }
  0xe1   : > { %575 = shalt.err (!%p572_p0)  }
  0xe2   : > { %184 = dma.hbm_to_vmem [thread:$0]  %s172_s17, 16, %s182_s15, %s165_s11 }
  0xe3   : > { %s151_s3 = sadd.s32 1, %s626_s3  }
  0xe4   : > { %p148_p1 = scmp.ge.s32.totalorder %s151_s3, 8  }
  0xe6   :  { %150 = sbr.rel (!%p148_p1) target bundleno = 189 (0xbd), region = 95 }
  0xed   :  { %606 = dma.done.wait [#allocation3], 16 }
  0xee   :  { %607 = vsyncadd [#allocation3], 4294967280 }
  0xef   :  { %608 = dma.done.wait [#allocation3 + $0x1], 16 }
  0xf0   :  { %609 = vsyncadd [#allocation3 + $0x1], 4294967280 }
  0xf1   :  { %610 = dma.done.wait [#allocation3 + $0x2], 16 }
  0xf2   :  { %611 = vsyncadd [#allocation3 + $0x2], 4294967280 }
  0xf3   :  { %612 = dma.done.wait [#allocation3 + $0x3], 16 }
  0xf4   :  { %613 = vsyncadd [#allocation3 + $0x3], 4294967280 }
  0xf5   :  { %614 = dma.done.wait [#allocation3 + $0x4], 16 }
  0xf6   :  { %615 = vsyncadd [#allocation3 + $0x4], 4294967280 }
  0xf7   :  { %616 = dma.done.wait [#allocation3 + $0x5], 16 }
  0xf8   :  { %617 = vsyncadd [#allocation3 + $0x5], 4294967280 }
  0xf9   :  { %618 = dma.done.wait [#allocation3 + $0x6], 16 }
  0xfa   :  { %619 = vsyncadd [#allocation3 + $0x6], 4294967280 }
  0xfb   :  { %620 = dma.done.wait [#allocation3 + $0x7], 16 }
  0xfc   :  { %621 = vsyncadd [#allocation3 + $0x7], 4294967280  ;;  %s637_s26 = smov [#allocation6]   ;;  %v202_v0 = vld [vmem:[#allocation2] sm:$0xff]  ;;  %v203_v1 = vld [vmem:[#allocation2 + $0x8] sm:$0xff] }
  0xfd   :  { %s211_s28 = sshll.u32 %s637_s26, 4  ;;  %204 = vst [vmem:[#allocation6] sm:$0xff] %v202_v0  ;;  %205 = vst [vmem:[#allocation6 + $0x8] sm:$0xff] %v203_v1  ;;  %s212_s28 = int_to_ptr.vmem [resolvable:$true] %s211_s28 }
  0xfe   :  { %s576_s1 = scalar_lea.vmem %s212_s28, 256  ;;  %p581_p3 = scmp.lt.s32.totalorder %s212_s28, %s212_s28 }
  0xff   :  { %p577_p2 = scmp.ne.s32.totalorder %s212_s28, %s576_s1  ;;  %p582_p4 = scmp.lt.s32.totalorder %s576_s1, %s576_s1 }
 0x101   :  { %p583_p5 = por %p582_p4, %p581_p3 }
 0x103   :  { %p584_p6 = pnand %p583_p5, %p577_p2 }
 0x105   :  { %587 = shalt.err (!%p584_p6)
}
 0x106   :  { %s588_s12 = scalar_lea.hbm %s828_s2, 256 }
 0x107   :  { %p589_p7 = scmp.ne.s32.totalorder %s828_s2, %s588_s12  ;;  %p592_p8 = scmp.lt.u32.totalorder %s588_s12, %s828_s2 }
 0x109   :  { %p594_p9 = pnand %p592_p8, %p589_p7 }
 0x10b   :  { %597 = shalt.err (!%p594_p9)
}
 0x10c   :  { %s638_s3 = smov 128   ;;  %s639_s4 = smov 8  }
 0x10d   :  { %217 = dma.vmem_to_hbm [thread:$0]  %s212_s28, 256, %s828_s2, [#allocation7], %s638_s3, %s638_s3, %s639_s4  }
 0x10e   :  { %622 = dma.done.wait [#allocation7], 256  }
 0x10f   :  { %623 = vsyncadd [#allocation7], 4294967040 }
 0x110   :  { %221 = vsyncpa [#allocation7], 1 }
 0x111   :  { %222 = vsyncmov [#allocation3] }
 0x114   :  { %s223_s7 = vpop.sfrf %222 }
 0x115   :  { %p322_p10 = scmp.ne.s32.totalorder %s223_s7, 0 }
 0x117   :  { %227 = shalt.err (%p322_p10)  }
 0x118   :  { %229 = vsyncmov [#allocation3 + $0x1] }
 0x11b   :  { %s230_s9 = vpop.sfrf %229 }
 0x11c   :  { %p323_p11 = scmp.ne.s32.totalorder %s230_s9, 0 }
 0x11e   :  { %234 = shalt.err (%p323_p11)  }
 0x11f   :  { %236 = vsyncmov [#allocation3 + $0x2] }
 0x122   :  { %s237_s10 = vpop.sfrf %236 }
 0x123   :  { %p324_p12 = scmp.ne.s32.totalorder %s237_s10, 0 }
 0x125   :  { %241 = shalt.err (%p324_p12)  }
 0x126   :  { %243 = vsyncmov [#allocation3 + $0x3] }
 0x129   :  { %s244_s11 = vpop.sfrf %243 }
 0x12a   :  { %p325_p13 = scmp.ne.s32.totalorder %s244_s11, 0 }
 0x12c   :  { %248 = shalt.err (%p325_p13)  }
 0x12d   :  { %250 = vsyncmov [#allocation3 + $0x4] }
 0x130   :  { %s251_s2 = vpop.sfrf %250 }
 0x131   :  { %p326_p0 = scmp.ne.s32.totalorder %s251_s2, 0 }
 0x133   :  { %255 = shalt.err (%p326_p0)  }
 0x134   :  { %257 = vsyncmov [#allocation3 + $0x5] }
 0x137   :  { %s258_s0 = vpop.sfrf %257 }
 0x138   :  { %p327_p1 = scmp.ne.s32.totalorder %s258_s0, 0 }
 0x13a   :  { %262 = shalt.err (%p327_p1)  }
 0x13b   :  { %264 = vsyncmov [#allocation3 + $0x6] }
 0x13e   :  { %s265_s13 = vpop.sfrf %264 }
 0x13f   :  { %p328_p2 = scmp.ne.s32.totalorder %s265_s13, 0 }
 0x141   :  { %269 = shalt.err (%p328_p2)  }
 0x142   :  { %271 = vsyncmov [#allocation3 + $0x7] }
 0x145   :  { %s272_s14 = vpop.sfrf %271 }
 0x146   :  { %p329_p3 = scmp.ne.s32.totalorder %s272_s14, 0 }
 0x148   :  { %276 = shalt.err (%p329_p3)  }

</bundles_post_ra>
